<compile_context>
chip_gen: v7x
topology: tpu7x:2x2x1
jax: 0.10.0
libtpu: 0.0.40
codegen_flags: <defaults>
</compile_context>

<pallas_src>
import math

import jax
import jax.numpy as jnp
from jax.experimental import pallas as pl
from jax.experimental.pallas import tpu as pltpu


def make_positional_encoding_table(d_model: int, max_len: int = 5000,
                                   dtype=jnp.float32) -> jnp.ndarray:
    """Deterministic sinusoidal table, identical to the PyTorch __init__.

    Note: for odd d_model PyTorch would raise on the cos assignment; here cos
    intentionally gets d_model // 2 columns instead.
    """
    position = jnp.arange(0, max_len, dtype=jnp.float32)[:, None]            # (max_len, 1)
    div_term = jnp.exp(jnp.arange(0, d_model, 2, dtype=jnp.float32)
                       * -(math.log(10000.0) / d_model))                     # (ceil(d/2),)
    angles = position * div_term                                             # (max_len, ceil(d/2))
    pe = jnp.zeros((max_len, d_model), dtype=jnp.float32)
    pe = pe.at[:, 0::2].set(jnp.sin(angles))
    pe = pe.at[:, 1::2].set(jnp.cos(angles)[:, : d_model // 2])
    return pe.astype(dtype)                                                  # (max_len, d_model)


def _pos_enc_kernel(x_ref, pe_ref, o_ref):
    # x_ref : (TB, TN) tile of the flattened activations
    # pe_ref: (1,  TN) tile of the flattened positional table (sublane-broadcast)
    o_ref[...] = x_ref[...] + pe_ref[...]


def _round_up(a: int, b: int) -> int:
    return ((a + b - 1) // b) * b


def _vmem_capacity_bytes() -> int:
    """Generation-aware VMEM capacity; conservative (v7x per-TC) fallback."""
    try:
        return int(pltpu.get_tpu_info().vmem_capacity_bytes)
    except Exception:
        return 64 * 1024 * 1024


def _choose_tiles(n_rows: int, n_lanes: int, itemsize: int):
    """Pick (row_tile, lane_tile) for the (n_rows, n_lanes) flattened add.

    * lane_tile is a multiple of 128 (no exact-divisibility requirement; the
      ragged last block is masked by Pallas).
    * VMEM footprint is computed with sublane rounding of the row count.
    * Target block size derives from queried VMEM capacity, clamped to 1-4 MiB,
      keeping 2 x (x + out + pe) blocks well under the 32 MiB scoped limit on
      all of v5e / v6e / v7x.
    * lane_tile is capped at ~half the lane extent so the grid has >= 2 steps
      (lets v7x shard the parallel axis across both TensorCores).
    """
    vmem_cap = _vmem_capacity_bytes()
    target_block_bytes = max(1 << 20, min(4 << 20, vmem_cap // 24))

    # Physical sublane granularity: f32 -> 8 rows/vreg, bf16 -> 16, int8 -> 32.
    row_gran = 8 * max(1, 4 // max(1, itemsize))
    tb = min(n_rows, 256)                       # cap rows/block so lanes stay wide
    rows_phys = _round_up(tb, row_gran)         # what the block really occupies

    tn = max(128, (target_block_bytes // (rows_phys * itemsize)) // 128 * 128)
    tn = min(tn, _round_up(n_lanes, 128))
    if n_lanes > 128:
        # Guarantee at least 2 lane-axis grid steps when possible.
        half = _round_up(pl.cdiv(n_lanes, 2), 128)
        tn = min(tn, max(128, half))
    return tb, tn


def positional_encoding_forward(x: jnp.ndarray, pe_table: jnp.ndarray) -> jnp.ndarray:
    """x: (B, S, D); pe_table: (max_len, D). Returns x + pe_table[:S] broadcast over B."""
    B, S, D = x.shape
    N = S * D
    itemsize = jnp.dtype(x.dtype).itemsize

    # Parameter glue: the `self.pe[:, :x.size(1)]` slice / dtype match.
    pe2 = pe_table[:S, :].astype(x.dtype).reshape(1, N)                      # (1, N)
    # Lane-dense layout plumbing: the add is elementwise, so a flat view is exact.
    x2 = x.reshape(B, N)                                                     # (B, N)

    tb, tn = _choose_tiles(B, N, itemsize)
    grid = (pl.cdiv(B, tb), pl.cdiv(N, tn))

    cost = pl.CostEstimate(
        flops=B * N,                                   # one add per element
        transcendentals=0,
        bytes_accessed=(2 * B * N + N) * itemsize,     # read x, write out, read pe once
    )

    out = pl.pallas_call(
        _pos_enc_kernel,
        out_shape=jax.ShapeDtypeStruct((B, N), x.dtype),
        grid_spec=pltpu.PrefetchScalarGridSpec(
            num_scalar_prefetch=0,
            grid=grid,
            in_specs=[
                pl.BlockSpec((tb, tn), lambda r, n: (r, n)),   # batch-row tile x lane tile
                pl.BlockSpec((1, tn), lambda r, n: (0, n)),    # matching pe lane tile
            ],
            out_specs=pl.BlockSpec((tb, tn), lambda r, n: (r, n)),
        ),
        compiler_params=pltpu.CompilerParams(
            dimension_semantics=("parallel", "parallel"),      # fully independent grid
            vmem_limit_bytes=32 * 1024 * 1024,                 # explicit; blocks sized well under
        ),
        cost_estimate=cost,
        # No input_output_aliases: without donation XLA would insert a defensive
        # copy of x (an extra full read+write), defeating the purpose.
    )(x2, pe2)

    return out.reshape(B, S, D)


if __name__ == "__main__":
    # Small shapes consistent with a transformer forward: batch=2, seq=8, d_model=32.
    B, S, D = 2, 8, 32
    MAX_LEN = 64  # small max_len for the synthetic table (module default is 5000)

    key = jax.random.PRNGKey(0)
    x = jax.random.normal(key, (B, S, D), dtype=jnp.float32)

    # Build the table once, already in the activation dtype (no per-call cast).
    pe_table = make_positional_encoding_table(D, max_len=MAX_LEN, dtype=x.dtype)

    fwd = jax.jit(positional_encoding_forward)
    out = jax.block_until_ready(fwd(x, pe_table))

    # Reference check against plain JAX (same math as the PyTorch forward).
    ref = x + pe_table[:S, :][None, :, :]
    assert out.shape == (B, S, D)
    assert jnp.allclose(out, ref, atol=1e-6, rtol=1e-6)

    print("KERNEL_OK")
</pallas_src>

<mosaic_0001>
module attributes {stable_mosaic.version = 11 : i64} {
  func.func @_pos_enc_kernel(%arg0: i32, %arg1: i32, %arg2: memref<2x128xf32, #tpu.memory_space<vmem>>, %arg3: memref<1x128xf32, #tpu.memory_space<vmem>>, %arg4: memref<2x128xf32, #tpu.memory_space<vmem>>) attributes {dimension_semantics = [#tpu.dimension_semantics<parallel>, #tpu.dimension_semantics<parallel>], iteration_bounds = array<i64: 1, 2>, scalar_prefetch = 0 : i64, scratch_operands = 0 : i64, tpu.core_type = #tpu.core_type<tc>, window_params = [{transform_indices = @transform_0, window_bounds = array<i64: 2, 128>}, {transform_indices = @transform_1, window_bounds = array<i64: 1, 128>}, {transform_indices = @transform_2, window_bounds = array<i64: 2, 128>}]} {
    %c0 = arith.constant 0 : index
    %c0_0 = arith.constant 0 : index
    %0 = vector.load %arg2[%c0, %c0_0] : memref<2x128xf32, #tpu.memory_space<vmem>>, vector<2x128xf32>
    %c0_1 = arith.constant 0 : index
    %c0_2 = arith.constant 0 : index
    %1 = vector.load %arg3[%c0_1, %c0_2] : memref<1x128xf32, #tpu.memory_space<vmem>>, vector<1x128xf32>
    %2 = vector.broadcast %1 : vector<1x128xf32> to vector<2x128xf32>
    %3 = arith.addf %0, %2 : vector<2x128xf32>
    %c0_3 = arith.constant 0 : index
    %c0_4 = arith.constant 0 : index
    %4 = vector.load %arg4[%c0_3, %c0_4] : memref<2x128xf32, #tpu.memory_space<vmem>>, vector<2x128xf32>
    tpu.vector_store %arg4[%c0_3, %c0_4], %3 {strides = array<i32>} : memref<2x128xf32, #tpu.memory_space<vmem>>, vector<2x128xf32>,
    return
  }
  func.func @transform_0(%arg0: i32, %arg1: i32) -> (i32, i32) {
    %c0_i32 = arith.constant 0 : i32
    return %arg0, %arg1 : i32, i32
  }
  func.func @transform_1(%arg0: i32, %arg1: i32) -> (i32, i32) {
    %c0_i32 = arith.constant 0 : i32
    %c0_i32_0 = arith.constant 0 : i32
    return %c0_i32, %arg1 : i32, i32
  }
  func.func @transform_2(%arg0: i32, %arg1: i32) -> (i32, i32) {
    %c0_i32 = arith.constant 0 : i32
    return %arg0, %arg1 : i32, i32
  }
}

</mosaic_0001>

<bundles_post_ra>
// kernel: positional_encoding_forward.1
= control target key start
LH: loop header
LB: loop body
LE: loop exit
PB: predicated region body
PF: predicated region fallthrough
CT: control target
= control target key end

     0   :  { %s364_s9 = smov 0   ;;  %s366_s10 = smov 0   ;;  %s383_s0 = inlined_call_operand.vmem [shape: f32[2,256], index: 0, kind: input, shape index: {}]   ;;  %s384_s1 = inlined_call_operand.vmem [shape: f32[1,256], index: 1, kind: input, shape index: {}]   ;;  %s385_s2 = inlined_call_operand.vmem [shape: f32[2,256], index: 2, kind: output, shape index: {}]  }
   0x1   :  { %s345_s11 = smov 0  }
   0x2 LB: > { %s21_s12 = sadd.s32 1, %s343_s10  ;;  %p295_p0 = scmp.ge.s32.totalorder %s347_s11, 1  ;;  %s347_s11 = sphi %s345_s11, %s12_s11   ;;  %s343_s10 = sphi %s366_s10, %s387_s10   ;;  %s339_s9 = sphi %s364_s9, %s386_s9  }
   0x3   : > { %p22_p1 = scmp.ge.s32.totalorder %s21_s12, 2  ;;  %p139_p2 = scmp.lt.s32.totalorder %s347_s11, 3 }
   0x5   : > { %s389_s12 = smov (%p22_p1, %s21_s12), 0  ;;  %p140_p3 = pnand %p295_p0, %p139_p2 }
   0x6   : > { %p172_p4 = scmp.lt.s32.totalorder (!%p140_p3), %s339_s9, 1 }
   0x7   : > { %143 = sbr.rel (%p140_p3) target bundleno = 21 (0x15), region = 28 }
   0xe   : > { %s391_s9 = smov (!%p172_p4, %s339_s9), 1 }
   0xf   : > { %s296_s13 = sshll.u32 %s391_s9, 1  ;;  %s180_s16 = scalar_lea.vmem %s384_s1, %s391_s9 }
  0x10   : > { %s177_s19 = scalar_lea.vmem %s383_s0, %s296_s13  ;;  %v298_v0 = vld [vmem:[%s180_s16] ss:$0 sm:$0xff]  ;;  %s188_s22 = scalar_lea.vmem %s385_s2, %s296_s13 }
  0x11   : > { %v189_v1 = vld [vmem:[%s177_s19] sm:$0x3] }
  0x12   : > { %v197_v2 = vadd.f32 %v298_v0, %v189_v1 }
  0x14   : > { %198 = vst [vmem:[%s188_s22] sm:$0x3] %v197_v2 }
  0x15 PF: > { %s12_s11 = sadd.s32 1, %s347_s11   ;;  %s386_s9 = smov %s343_s10 }
  0x16   : > { %p9_p5 = scmp.ge.s32.totalorder %s12_s11, 4   ;;  %s387_s10 = smov %s389_s12 }
  0x18   :  { %11 = sbr.rel (!%p9_p5) target bundleno = 2 (0x2), region = 61 }

</bundles_post_ra>
